<compile_context>
chip_gen: v6e
topology: v6e:2x2x1
jax: 0.10.0
libtpu: 0.0.40
codegen_flags: <defaults>
</compile_context>

<pallas_src>
import jax
import jax.numpy as jnp
import numpy as np
from jax.experimental import pallas as pl
from jax.experimental.pallas import tpu as pltpu

BN_EPS = 1e-5
VMEM_LIMIT_BYTES = 32 * 1024 * 1024   # <= v7x 64 MiB physical, > v5e 16 MiB default scoped
FUSED_VMEM_BUDGET = 8 * 1024 * 1024   # x + y-scratch + out fully resident, with headroom
BLOCK_BYTES_BUDGET = 4 * 1024 * 1024  # per-step x+out block (Pallas double-buffers it)


# ---------------------------------------------------------------------------
# Tiny-K matmul helper: VPU broadcast-FMA for the 1x1-conv channel contraction
# ---------------------------------------------------------------------------
def _mm_f32(w, x):
    """(O, K) @ (K, M) -> (O, M) in f32.

    For K = Cin <= 8 an MXU matmul pads a 128x128 / 256x256 tile to ~3%
    utilization and pays push + result-FIFO pop latency for a handful of rows;
    an unrolled VPU broadcast-FMA is a few vmul/vadd per 128-lane chunk and
    keeps the MXU off the per-tile critical path.  Falls back to MXU otherwise.
    """
    O, K = w.shape
    if K <= 8:
        acc = w[:, 0:1].astype(jnp.float32) * x[0:1, :].astype(jnp.float32)
        for k in range(1, K):
            acc = acc + (w[:, k:k + 1].astype(jnp.float32) *
                         x[k:k + 1, :].astype(jnp.float32))
        return acc
    return jnp.dot(w, x, preferred_element_type=jnp.float32)


# ---------------------------------------------------------------------------
# Fused single-pass kernel (whole activation resident in VMEM)
# ---------------------------------------------------------------------------
def fused_kernel(x_ref, w1_ref, w2_ref, gamma_ref, beta_ref, o_ref, y_sc):
    # x_ref:   (N, Cin, HW) lane-dense, fully resident
    # w1_ref:  (Cin, Cin);  w2_ref: (Cout, Cin); gamma/beta: (Cin, 1)
    # o_ref:   (N, Cout, HW)
    # y_sc:    (N, Cin, HW) f32 scratch holding relu(conv1(x))
    n_samples = x_ref.shape[0]
    m_total = n_samples * x_ref.shape[2]

    # conv1 + ReLU, accumulate per-channel sums.
    sum_y = None
    for n in range(n_samples):
        y = jnp.maximum(_mm_f32(w1_ref[...], x_ref[n]), 0.0)      # (Cin, HW)
        y_sc[n] = y
        part = jnp.sum(y, axis=1, keepdims=True)                  # (Cin, 1)
        sum_y = part if sum_y is None else sum_y + part
    mean = sum_y / m_total                                        # (Cin, 1)

    # Centered (two-pass) variance: matches the reference exactly and avoids
    # E[y^2]-E[y]^2 cancellation.
    var_acc = None
    for n in range(n_samples):
        c = y_sc[n] - mean
        part = jnp.sum(c * c, axis=1, keepdims=True)
        var_acc = part if var_acc is None else var_acc + part
    var = var_acc / m_total
    scale = gamma_ref[...] * jax.lax.rsqrt(var + BN_EPS)          # (Cin, 1)
    shift = beta_ref[...] - mean * scale                          # (Cin, 1)

    # BN + conv2.
    for n in range(n_samples):
        y_bn = y_sc[n] * scale + shift                            # (Cin, HW)
        o_ref[n] = _mm_f32(w2_ref[...], y_bn).astype(o_ref.dtype)


# ---------------------------------------------------------------------------
# Tiled pass 1: per-channel sum / sum-of-squares of relu(conv1(x))
# ---------------------------------------------------------------------------
def stats_kernel(x_ref, w1_ref, sum_ref, sumsq_ref):
    # x_ref:   (Nb, Cin, tm) lane-dense pixel tile for Nb samples
    # sum_ref / sumsq_ref: (1, Cin, 1) per-sample-block resident accumulators
    # (pixel-tile axis = reduction axis, held resident across it)
    @pl.when(pl.program_id(1) == 0)
    def _init():
        sum_ref[...] = jnp.zeros_like(sum_ref)
        sumsq_ref[...] = jnp.zeros_like(sumsq_ref)

    nb = x_ref.shape[0]
    acc_s = None
    acc_q = None
    for b in range(nb):
        y = jnp.maximum(_mm_f32(w1_ref[...], x_ref[b]), 0.0)      # (Cin, tm)
        s = jnp.sum(y, axis=1, keepdims=True)
        q = jnp.sum(y * y, axis=1, keepdims=True)
        acc_s = s if acc_s is None else acc_s + s
        acc_q = q if acc_q is None else acc_q + q
    # TODO(synk): if XLU reductions ever show on the critical path, accumulate
    # into a (Cin, 128) lane-wide scratch and reduce once on the last step.
    sum_ref[0] += acc_s
    sumsq_ref[0] += acc_q


# ---------------------------------------------------------------------------
# Tiled pass 2: out = W2' @ relu(W1 @ x) + bias    (BN folded into W2'/bias)
# ---------------------------------------------------------------------------
def apply_kernel(x_ref, w1_ref, w2s_ref, bias_ref, o_ref):
    # x_ref: (Nb, Cin, tm); w2s_ref: (Cout, Cin) BN-scaled; bias_ref: (Cout, 1)
    # o_ref: (Nb, Cout, tm) lane-dense output tile
    nb = x_ref.shape[0]
    for b in range(nb):
        y = jnp.maximum(_mm_f32(w1_ref[...], x_ref[b]), 0.0)
        out = _mm_f32(w2s_ref[...], y) + bias_ref[...]            # lane-broadcast bias
        o_ref[b] = out.astype(o_ref.dtype)


# ---------------------------------------------------------------------------
# Block-size selection
# ---------------------------------------------------------------------------
def _pick_tile(hw, max_tile=8192):
    """Largest multiple-of-128 tile <= max_tile that evenly divides hw."""
    best = None
    t = 128
    while t <= min(hw, max_tile):
        if hw % t == 0:
            best = t
        t += 128
    # Fallback: full H*W block (valid; lane-masked stores if HW % 128 != 0 is
    # a perf cliff, not a correctness issue).
    return best if best is not None else hw


def _pick_nb(n, cin, cout, tm):
    """Largest sample-block that (a) divides N, (b) keeps the per-step x+out
    block under the VMEM budget, (c) leaves >= 2 sample-blocks when N >= 2 so
    the pass-1 'parallel' sample axis can still be megacore-sharded on v7x."""
    cap = max(1, n // 2) if n >= 2 else 1
    best = 1
    for nb in range(1, cap + 1):
        if n % nb:
            continue
        if nb * (cin + cout) * tm * 4 <= BLOCK_BYTES_BUDGET:
            best = nb
    return best


# ---------------------------------------------------------------------------
# Wrapper
# ---------------------------------------------------------------------------
def cnn_forward(x_nchw, w1_oi, w2_oi, gamma, beta, *,
                tile_m=None, force_tiled=False, compute_dtype=jnp.float32):
    """x_nchw: (N, Cin, H, W); w1_oi: (Cin, Cin); w2_oi: (Cout, Cin).

    compute_dtype=jnp.bfloat16 halves HBM input traffic (~1.4-2x on bandwidth-
    bound shapes, all gens); left f32 by default to hold the 1e-4 tolerance.
    """
    N, Cin, H, W = x_nchw.shape
    Cout = w2_oi.shape[0]
    HW = H * W
    M = N * HW

    # Lane-dense layout: channels on sublanes, pixels on the 128-lane axis.
    # NCHW already has H*W contiguous per channel -> free reshape.
    x3 = x_nchw.reshape(N, Cin, HW).astype(compute_dtype)
    w1 = w1_oi.astype(compute_dtype)

    # ------------------ fused single-pass fast path ------------------------
    fused_bytes = 4 * N * HW * (2 * Cin + Cout) + 4 * (2 * Cin * Cin + Cout * Cin)
    if (not force_tiled) and fused_bytes <= FUSED_VMEM_BUDGET:
        out3 = pl.pallas_call(
            fused_kernel,
            out_shape=jax.ShapeDtypeStruct((N, Cout, HW), jnp.float32),
            in_specs=[pl.BlockSpec(memory_space=pltpu.MemorySpace.VMEM)] * 5,
            out_specs=pl.BlockSpec(memory_space=pltpu.MemorySpace.VMEM),
            scratch_shapes=[pltpu.VMEM((N, Cin, HW), jnp.float32)],
            compiler_params=pltpu.CompilerParams(
                vmem_limit_bytes=VMEM_LIMIT_BYTES),
        )(x3, w1, w2_oi.astype(compute_dtype),
          gamma.reshape(Cin, 1).astype(jnp.float32),
          beta.reshape(Cin, 1).astype(jnp.float32))
        return out3.reshape(N, Cout, H, W)

    # ------------------ tiled two-pass path ---------------------------------
    tm = _pick_tile(HW) if tile_m is None else _pick_tile(HW, max_tile=tile_m)
    n_tiles = HW // tm
    nb = _pick_nb(N, Cin, Cout, tm)
    n_blocks = N // nb
    grid = (n_blocks, n_tiles)

    # Pass 1: batch statistics of relu(conv1(x)).  Accumulators are per
    # sample-block so the sample axis can be "parallel" (v7x megacore shards
    # it); the pixel-tile axis is the reduction axis.
    sums, sumsqs = pl.pallas_call(
        stats_kernel,
        out_shape=(jax.ShapeDtypeStruct((n_blocks, Cin, 1), jnp.float32),
                   jax.ShapeDtypeStruct((n_blocks, Cin, 1), jnp.float32)),
        grid_spec=pltpu.PrefetchScalarGridSpec(
            num_scalar_prefetch=0,
            grid=grid,
            in_specs=[pl.BlockSpec((nb, Cin, tm), lambda i, t: (i, 0, t)),
                      pl.BlockSpec((Cin, Cin), lambda i, t: (0, 0))],
            out_specs=[pl.BlockSpec((1, Cin, 1), lambda i, t: (i, 0, 0)),
                       pl.BlockSpec((1, Cin, 1), lambda i, t: (i, 0, 0))]),
        compiler_params=pltpu.CompilerParams(
            dimension_semantics=("parallel", "arbitrary"),
            vmem_limit_bytes=VMEM_LIMIT_BYTES),
    )(x3, w1)

    # Tiny O(C^2) fold in XLA: biased batch var, BN folded into conv2.
    sum_y = jnp.sum(sums, axis=0)                                 # (Cin, 1)
    sumsq_y = jnp.sum(sumsqs, axis=0)                             # (Cin, 1)
    mean = sum_y / M
    var = jnp.maximum(sumsq_y / M - mean * mean, 0.0)             # biased var
    s = gamma.reshape(Cin, 1).astype(jnp.float32) * jax.lax.rsqrt(var + BN_EPS)
    w2_scaled = (w2_oi.astype(jnp.float32) * s.reshape(1, Cin)).astype(compute_dtype)
    bias = jnp.dot(w2_oi.astype(jnp.float32),
                   beta.reshape(Cin, 1).astype(jnp.float32) - mean * s)   # (Cout, 1)

    # Pass 2: recompute relu(conv1(x_tile)) (K = Cin tiny) + folded conv2.
    out3 = pl.pallas_call(
        apply_kernel,
        out_shape=jax.ShapeDtypeStruct((N, Cout, HW), jnp.float32),
        grid_spec=pltpu.PrefetchScalarGridSpec(
            num_scalar_prefetch=0,
            grid=grid,
            in_specs=[pl.BlockSpec((nb, Cin, tm), lambda i, t: (i, 0, t)),
                      pl.BlockSpec((Cin, Cin), lambda i, t: (0, 0)),
                      pl.BlockSpec((Cout, Cin), lambda i, t: (0, 0)),
                      pl.BlockSpec((Cout, 1), lambda i, t: (0, 0))],
            out_specs=pl.BlockSpec((nb, Cout, tm), lambda i, t: (i, 0, t))),
        compiler_params=pltpu.CompilerParams(
            dimension_semantics=("parallel", "parallel"),
            vmem_limit_bytes=VMEM_LIMIT_BYTES),
    )(x3, w1, w2_scaled, bias)

    return out3.reshape(N, Cout, H, W)


# ---------------------------------------------------------------------------
# Pure-JAX reference (PyTorch train-mode BN semantics)
# ---------------------------------------------------------------------------
def cnn_reference(x_nchw, w1_oi, w2_oi, gamma, beta):
    y = jnp.einsum("nchw,oc->nohw", x_nchw, w1_oi)
    y = jnp.maximum(y, 0.0)
    mean = jnp.mean(y, axis=(0, 2, 3), keepdims=True)
    var = jnp.mean((y - mean) ** 2, axis=(0, 2, 3), keepdims=True)
    y = (y - mean) * jax.lax.rsqrt(var + BN_EPS)
    y = y * gamma.reshape(1, -1, 1, 1) + beta.reshape(1, -1, 1, 1)
    return jnp.einsum("nchw,oc->nohw", y, w2_oi)


if __name__ == "__main__":
    N, Cin, H, W = 2, 4, 16, 16
    Cout = 8

    key = jax.random.PRNGKey(0)
    kx, k1, k2, kg, kb = jax.random.split(key, 5)

    x = jax.random.normal(kx, (N, Cin, H, W), dtype=jnp.float32)
    w1 = jax.random.normal(k1, (Cin, Cin), dtype=jnp.float32) / np.sqrt(Cin)
    w2 = jax.random.normal(k2, (Cout, Cin), dtype=jnp.float32) / np.sqrt(Cin)
    gamma = 1.0 + 0.1 * jax.random.normal(kg, (Cin,), dtype=jnp.float32)
    beta = 0.1 * jax.random.normal(kb, (Cin,), dtype=jnp.float32)

    ref = jax.block_until_ready(cnn_reference(x, w1, w2, gamma, beta))

    # Fused single-pass path (whole activation resident in VMEM).
    out_fused = jax.block_until_ready(cnn_forward(x, w1, w2, gamma, beta))
    assert out_fused.shape == (N, Cout, H, W)
    np.testing.assert_allclose(np.asarray(out_fused), np.asarray(ref),
                               rtol=1e-4, atol=1e-4)

    # Tiled two-pass path (forced; tile_m=128 -> grid (2, 2) exercises the
    # resident per-sample-block accumulators, BN fold, and apply pass).
    out_tiled = jax.block_until_ready(
        cnn_forward(x, w1, w2, gamma, beta, force_tiled=True, tile_m=128))
    np.testing.assert_allclose(np.asarray(out_tiled), np.asarray(ref),
                               rtol=1e-4, atol=1e-4)

    print("KERNEL_OK")
</pallas_src>

<mosaic_0001>
module attributes {stable_mosaic.version = 11 : i64} {
  func.func @fused_kernel(%arg0: memref<2x4x256xf32, #tpu.memory_space<vmem>>, %arg1: memref<4x4xf32, #tpu.memory_space<vmem>>, %arg2: memref<8x4xf32, #tpu.memory_space<vmem>>, %arg3: memref<4x1xf32, #tpu.memory_space<vmem>>, %arg4: memref<4x1xf32, #tpu.memory_space<vmem>>, %arg5: memref<2x8x256xf32, #tpu.memory_space<vmem>>, %arg6: memref<2x4x256xf32, #tpu.memory_space<vmem>>) attributes {dimension_semantics = [], scalar_prefetch = 0 : i64, scratch_operands = 1 : i64, tpu.core_type = #tpu.core_type<tc>} {
    %c0 = arith.constant 0 : index
    %c0_0 = arith.constant 0 : index
    %0 = vector.load %arg1[%c0, %c0_0] : memref<4x4xf32, #tpu.memory_space<vmem>>, vector<4x4xf32>
    %c0_1 = arith.constant 0 : index
    %c0_2 = arith.constant 0 : index
    %c0_3 = arith.constant 0 : index
    %1 = vector.load %arg0[%c0_1, %c0_2, %c0_3] : memref<2x4x256xf32, #tpu.memory_space<vmem>>, vector<1x4x256xf32>
    %2 = vector.shape_cast %1 : vector<1x4x256xf32> to vector<4x256xf32>
    %3 = vector.extract_strided_slice %0 {offsets = [0, 0], sizes = [4, 1], strides = [1, 1]} : vector<4x4xf32> to vector<4x1xf32>
    %4 = vector.extract_strided_slice %2 {offsets = [0, 0], sizes = [1, 256], strides = [1, 1]} : vector<4x256xf32> to vector<1x256xf32>
    %5 = vector.broadcast %3 : vector<4x1xf32> to vector<4x256xf32>
    %6 = vector.broadcast %4 : vector<1x256xf32> to vector<4x256xf32>
    %7 = arith.mulf %5, %6 : vector<4x256xf32>
    %8 = vector.extract_strided_slice %0 {offsets = [0, 1], sizes = [4, 1], strides = [1, 1]} : vector<4x4xf32> to vector<4x1xf32>
    %9 = vector.extract_strided_slice %2 {offsets = [1, 0], sizes = [1, 256], strides = [1, 1]} : vector<4x256xf32> to vector<1x256xf32>
    %10 = vector.broadcast %8 : vector<4x1xf32> to vector<4x256xf32>
    %11 = vector.broadcast %9 : vector<1x256xf32> to vector<4x256xf32>
    %12 = arith.mulf %10, %11 : vector<4x256xf32>
    %13 = arith.addf %7, %12 : vector<4x256xf32>
    %14 = vector.extract_strided_slice %0 {offsets = [0, 2], sizes = [4, 1], strides = [1, 1]} : vector<4x4xf32> to vector<4x1xf32>
    %15 = vector.extract_strided_slice %2 {offsets = [2, 0], sizes = [1, 256], strides = [1, 1]} : vector<4x256xf32> to vector<1x256xf32>
    %16 = vector.broadcast %14 : vector<4x1xf32> to vector<4x256xf32>
    %17 = vector.broadcast %15 : vector<1x256xf32> to vector<4x256xf32>
    %18 = arith.mulf %16, %17 : vector<4x256xf32>
    %19 = arith.addf %13, %18 : vector<4x256xf32>
    %20 = vector.extract_strided_slice %0 {offsets = [0, 3], sizes = [4, 1], strides = [1, 1]} : vector<4x4xf32> to vector<4x1xf32>
    %21 = vector.extract_strided_slice %2 {offsets = [3, 0], sizes = [1, 256], strides = [1, 1]} : vector<4x256xf32> to vector<1x256xf32>
    %22 = vector.broadcast %20 : vector<4x1xf32> to vector<4x256xf32>
    %23 = vector.broadcast %21 : vector<1x256xf32> to vector<4x256xf32>
    %24 = arith.mulf %22, %23 : vector<4x256xf32>
    %25 = arith.addf %19, %24 : vector<4x256xf32>
    %cst = arith.constant 0.000000e+00 : f32
    %26 = vector.broadcast %cst : f32 to vector<4x256xf32>
    %27 = arith.maximumf %25, %26 : vector<4x256xf32>
    %c0_4 = arith.constant 0 : index
    %c0_5 = arith.constant 0 : index
    %c0_6 = arith.constant 0 : index
    %28 = vector.load %arg6[%c0_4, %c0_5, %c0_6] : memref<2x4x256xf32, #tpu.memory_space<vmem>>, vector<1x4x256xf32>
    %29 = vector.shape_cast %28 : vector<1x4x256xf32> to vector<4x256xf32>
    %30 = vector.shape_cast %27 : vector<4x256xf32> to vector<1x4x256xf32>
    tpu.vector_store %arg6[%c0_4, %c0_5, %c0_6], %30 {strides = array<i32>} : memref<2x4x256xf32, #tpu.memory_space<vmem>>, vector<1x4x256xf32>,
    %cst_7 = arith.constant dense<0.000000e+00> : vector<4xf32>
    %31 = vector.multi_reduction <add>, %27, %cst_7 [1] : vector<4x256xf32> to vector<4xf32>
    %32 = vector.shape_cast %31 : vector<4xf32> to vector<4x1xf32>
    %c0_8 = arith.constant 0 : index
    %c0_9 = arith.constant 0 : index
    %33 = vector.load %arg1[%c0_8, %c0_9] : memref<4x4xf32, #tpu.memory_space<vmem>>, vector<4x4xf32>
    %c1 = arith.constant 1 : index
    %c0_10 = arith.constant 0 : index
    %c0_11 = arith.constant 0 : index
    %34 = vector.load %arg0[%c1, %c0_10, %c0_11] : memref<2x4x256xf32, #tpu.memory_space<vmem>>, vector<1x4x256xf32>
    %35 = vector.shape_cast %34 : vector<1x4x256xf32> to vector<4x256xf32>
    %36 = vector.extract_strided_slice %33 {offsets = [0, 0], sizes = [4, 1], strides = [1, 1]} : vector<4x4xf32> to vector<4x1xf32>
    %37 = vector.extract_strided_slice %35 {offsets = [0, 0], sizes = [1, 256], strides = [1, 1]} : vector<4x256xf32> to vector<1x256xf32>
    %38 = vector.broadcast %36 : vector<4x1xf32> to vector<4x256xf32>
    %39 = vector.broadcast %37 : vector<1x256xf32> to vector<4x256xf32>
    %40 = arith.mulf %38, %39 : vector<4x256xf32>
    %41 = vector.extract_strided_slice %33 {offsets = [0, 1], sizes = [4, 1], strides = [1, 1]} : vector<4x4xf32> to vector<4x1xf32>
    %42 = vector.extract_strided_slice %35 {offsets = [1, 0], sizes = [1, 256], strides = [1, 1]} : vector<4x256xf32> to vector<1x256xf32>
    %43 = vector.broadcast %41 : vector<4x1xf32> to vector<4x256xf32>
    %44 = vector.broadcast %42 : vector<1x256xf32> to vector<4x256xf32>
    %45 = arith.mulf %43, %44 : vector<4x256xf32>
    %46 = arith.addf %40, %45 : vector<4x256xf32>
    %47 = vector.extract_strided_slice %33 {offsets = [0, 2], sizes = [4, 1], strides = [1, 1]} : vector<4x4xf32> to vector<4x1xf32>
    %48 = vector.extract_strided_slice %35 {offsets = [2, 0], sizes = [1, 256], strides = [1, 1]} : vector<4x256xf32> to vector<1x256xf32>
    %49 = vector.broadcast %47 : vector<4x1xf32> to vector<4x256xf32>
    %50 = vector.broadcast %48 : vector<1x256xf32> to vector<4x256xf32>
    %51 = arith.mulf %49, %50 : vector<4x256xf32>
    %52 = arith.addf %46, %51 : vector<4x256xf32>
    %53 = vector.extract_strided_slice %33 {offsets = [0, 3], sizes = [4, 1], strides = [1, 1]} : vector<4x4xf32> to vector<4x1xf32>
    %54 = vector.extract_strided_slice %35 {offsets = [3, 0], sizes = [1, 256], strides = [1, 1]} : vector<4x256xf32> to vector<1x256xf32>
    %55 = vector.broadcast %53 : vector<4x1xf32> to vector<4x256xf32>
    %56 = vector.broadcast %54 : vector<1x256xf32> to vector<4x256xf32>
    %57 = arith.mulf %55, %56 : vector<4x256xf32>
    %58 = arith.addf %52, %57 : vector<4x256xf32>
    %cst_12 = arith.constant 0.000000e+00 : f32
    %59 = vector.broadcast %cst_12 : f32 to vector<4x256xf32>
    %60 = arith.maximumf %58, %59 : vector<4x256xf32>
    %c1_13 = arith.constant 1 : index
    %c0_14 = arith.constant 0 : index
    %c0_15 = arith.constant 0 : index
    %61 = vector.load %arg6[%c1_13, %c0_14, %c0_15] : memref<2x4x256xf32, #tpu.memory_space<vmem>>, vector<1x4x256xf32>
    %62 = vector.shape_cast %61 : vector<1x4x256xf32> to vector<4x256xf32>
    %63 = vector.shape_cast %60 : vector<4x256xf32> to vector<1x4x256xf32>
    tpu.vector_store %arg6[%c1_13, %c0_14, %c0_15], %63 {strides = array<i32>} : memref<2x4x256xf32, #tpu.memory_space<vmem>>, vector<1x4x256xf32>,
    %cst_16 = arith.constant dense<0.000000e+00> : vector<4xf32>
    %64 = vector.multi_reduction <add>, %60, %cst_16 [1] : vector<4x256xf32> to vector<4xf32>
    %65 = vector.shape_cast %64 : vector<4xf32> to vector<4x1xf32>
    %66 = arith.addf %32, %65 : vector<4x1xf32>
    %cst_17 = arith.constant 5.120000e+02 : f32
    %67 = vector.broadcast %cst_17 : f32 to vector<4x1xf32>
    %68 = arith.divf %66, %67 : vector<4x1xf32>
    %c0_18 = arith.constant 0 : index
    %c0_19 = arith.constant 0 : index
    %c0_20 = arith.constant 0 : index
    %69 = vector.load %arg6[%c0_18, %c0_19, %c0_20] : memref<2x4x256xf32, #tpu.memory_space<vmem>>, vector<1x4x256xf32>
    %70 = vector.shape_cast %69 : vector<1x4x256xf32> to vector<4x256xf32>
    %71 = vector.broadcast %68 : vector<4x1xf32> to vector<4x256xf32>
    %72 = arith.subf %70, %71 : vector<4x256xf32>
    %73 = arith.mulf %72, %72 : vector<4x256xf32>
    %cst_21 = arith.constant dense<0.000000e+00> : vector<4xf32>
    %74 = vector.multi_reduction <add>, %73, %cst_21 [1] : vector<4x256xf32> to vector<4xf32>
    %75 = vector.shape_cast %74 : vector<4xf32> to vector<4x1xf32>
    %c1_22 = arith.constant 1 : index
    %c0_23 = arith.constant 0 : index
    %c0_24 = arith.constant 0 : index
    %76 = vector.load %arg6[%c1_22, %c0_23, %c0_24] : memref<2x4x256xf32, #tpu.memory_space<vmem>>, vector<1x4x256xf32>
    %77 = vector.shape_cast %76 : vector<1x4x256xf32> to vector<4x256xf32>
    %78 = vector.broadcast %68 : vector<4x1xf32> to vector<4x256xf32>
    %79 = arith.subf %77, %78 : vector<4x256xf32>
    %80 = arith.mulf %79, %79 : vector<4x256xf32>
    %cst_25 = arith.constant dense<0.000000e+00> : vector<4xf32>
    %81 = vector.multi_reduction <add>, %80, %cst_25 [1] : vector<4x256xf32> to vector<4xf32>
    %82 = vector.shape_cast %81 : vector<4xf32> to vector<4x1xf32>
    %83 = arith.addf %75, %82 : vector<4x1xf32>
    %cst_26 = arith.constant 5.120000e+02 : f32
    %84 = vector.broadcast %cst_26 : f32 to vector<4x1xf32>
    %85 = arith.divf %83, %84 : vector<4x1xf32>
    %c0_27 = arith.constant 0 : index
    %c0_28 = arith.constant 0 : index
    %86 = vector.load %arg3[%c0_27, %c0_28] : memref<4x1xf32, #tpu.memory_space<vmem>>, vector<4x1xf32>
    %cst_29 = arith.constant 9.99999974E-6 : f32
    %87 = vector.broadcast %cst_29 : f32 to vector<4x1xf32>
    %88 = arith.addf %85, %87 : vector<4x1xf32>
    %89 = math.rsqrt %88 : vector<4x1xf32>
    %90 = arith.mulf %86, %89 : vector<4x1xf32>
    %c0_30 = arith.constant 0 : index
    %c0_31 = arith.constant 0 : index
    %91 = vector.load %arg4[%c0_30, %c0_31] : memref<4x1xf32, #tpu.memory_space<vmem>>, vector<4x1xf32>
    %92 = arith.mulf %68, %90 : vector<4x1xf32>
    %93 = arith.subf %91, %92 : vector<4x1xf32>
    %c0_32 = arith.constant 0 : index
    %c0_33 = arith.constant 0 : index
    %c0_34 = arith.constant 0 : index
    %94 = vector.load %arg6[%c0_32, %c0_33, %c0_34] : memref<2x4x256xf32, #tpu.memory_space<vmem>>, vector<1x4x256xf32>
    %95 = vector.shape_cast %94 : vector<1x4x256xf32> to vector<4x256xf32>
    %96 = vector.broadcast %90 : vector<4x1xf32> to vector<4x256xf32>
    %97 = arith.mulf %95, %96 : vector<4x256xf32>
    %98 = vector.broadcast %93 : vector<4x1xf32> to vector<4x256xf32>
    %99 = arith.addf %97, %98 : vector<4x256xf32>
    %c0_35 = arith.constant 0 : index
    %c0_36 = arith.constant 0 : index
    %100 = vector.load %arg2[%c0_35, %c0_36] : memref<8x4xf32, #tpu.memory_space<vmem>>, vector<8x4xf32>
    %101 = vector.extract_strided_slice %100 {offsets = [0, 0], sizes = [8, 1], strides = [1, 1]} : vector<8x4xf32> to vector<8x1xf32>
    %102 = vector.extract_strided_slice %99 {offsets = [0, 0], sizes = [1, 256], strides = [1, 1]} : vector<4x256xf32> to vector<1x256xf32>
    %103 = vector.broadcast %101 : vector<8x1xf32> to vector<8x256xf32>
    %104 = vector.broadcast %102 : vector<1x256xf32> to vector<8x256xf32>
    %105 = arith.mulf %103, %104 : vector<8x256xf32>
    %106 = vector.extract_strided_slice %100 {offsets = [0, 1], sizes = [8, 1], strides = [1, 1]} : vector<8x4xf32> to vector<8x1xf32>
    %107 = vector.extract_strided_slice %99 {offsets = [1, 0], sizes = [1, 256], strides = [1, 1]} : vector<4x256xf32> to vector<1x256xf32>
    %108 = vector.broadcast %106 : vector<8x1xf32> to vector<8x256xf32>
    %109 = vector.broadcast %107 : vector<1x256xf32> to vector<8x256xf32>
    %110 = arith.mulf %108, %109 : vector<8x256xf32>
    %111 = arith.addf %105, %110 : vector<8x256xf32>
    %112 = vector.extract_strided_slice %100 {offsets = [0, 2], sizes = [8, 1], strides = [1, 1]} : vector<8x4xf32> to vector<8x1xf32>
    %113 = vector.extract_strided_slice %99 {offsets = [2, 0], sizes = [1, 256], strides = [1, 1]} : vector<4x256xf32> to vector<1x256xf32>
    %114 = vector.broadcast %112 : vector<8x1xf32> to vector<8x256xf32>
    %115 = vector.broadcast %113 : vector<1x256xf32> to vector<8x256xf32>
    %116 = arith.mulf %114, %115 : vector<8x256xf32>
    %117 = arith.addf %111, %116 : vector<8x256xf32>
    %118 = vector.extract_strided_slice %100 {offsets = [0, 3], sizes = [8, 1], strides = [1, 1]} : vector<8x4xf32> to vector<8x1xf32>
    %119 = vector.extract_strided_slice %99 {offsets = [3, 0], sizes = [1, 256], strides = [1, 1]} : vector<4x256xf32> to vector<1x256xf32>
    %120 = vector.broadcast %118 : vector<8x1xf32> to vector<8x256xf32>
    %121 = vector.broadcast %119 : vector<1x256xf32> to vector<8x256xf32>
    %122 = arith.mulf %120, %121 : vector<8x256xf32>
    %123 = arith.addf %117, %122 : vector<8x256xf32>
    %c0_37 = arith.constant 0 : index
    %c0_38 = arith.constant 0 : index
    %c0_39 = arith.constant 0 : index
    %124 = vector.load %arg5[%c0_37, %c0_38, %c0_39] : memref<2x8x256xf32, #tpu.memory_space<vmem>>, vector<1x8x256xf32>
    %125 = vector.shape_cast %124 : vector<1x8x256xf32> to vector<8x256xf32>
    %126 = vector.shape_cast %123 : vector<8x256xf32> to vector<1x8x256xf32>
    tpu.vector_store %arg5[%c0_37, %c0_38, %c0_39], %126 {strides = array<i32>} : memref<2x8x256xf32, #tpu.memory_space<vmem>>, vector<1x8x256xf32>,
    %c1_40 = arith.constant 1 : index
    %c0_41 = arith.constant 0 : index
    %c0_42 = arith.constant 0 : index
    %127 = vector.load %arg6[%c1_40, %c0_41, %c0_42] : memref<2x4x256xf32, #tpu.memory_space<vmem>>, vector<1x4x256xf32>
    %128 = vector.shape_cast %127 : vector<1x4x256xf32> to vector<4x256xf32>
    %129 = vector.broadcast %90 : vector<4x1xf32> to vector<4x256xf32>
    %130 = arith.mulf %128, %129 : vector<4x256xf32>
    %131 = vector.broadcast %93 : vector<4x1xf32> to vector<4x256xf32>
    %132 = arith.addf %130, %131 : vector<4x256xf32>
    %c0_43 = arith.constant 0 : index
    %c0_44 = arith.constant 0 : index
    %133 = vector.load %arg2[%c0_43, %c0_44] : memref<8x4xf32, #tpu.memory_space<vmem>>, vector<8x4xf32>
    %134 = vector.extract_strided_slice %133 {offsets = [0, 0], sizes = [8, 1], strides = [1, 1]} : vector<8x4xf32> to vector<8x1xf32>
    %135 = vector.extract_strided_slice %132 {offsets = [0, 0], sizes = [1, 256], strides = [1, 1]} : vector<4x256xf32> to vector<1x256xf32>
    %136 = vector.broadcast %134 : vector<8x1xf32> to vector<8x256xf32>
    %137 = vector.broadcast %135 : vector<1x256xf32> to vector<8x256xf32>
    %138 = arith.mulf %136, %137 : vector<8x256xf32>
    %139 = vector.extract_strided_slice %133 {offsets = [0, 1], sizes = [8, 1], strides = [1, 1]} : vector<8x4xf32> to vector<8x1xf32>
    %140 = vector.extract_strided_slice %132 {offsets = [1, 0], sizes = [1, 256], strides = [1, 1]} : vector<4x256xf32> to vector<1x256xf32>
    %141 = vector.broadcast %139 : vector<8x1xf32> to vector<8x256xf32>
    %142 = vector.broadcast %140 : vector<1x256xf32> to vector<8x256xf32>
    %143 = arith.mulf %141, %142 : vector<8x256xf32>
    %144 = arith.addf %138, %143 : vector<8x256xf32>
    %145 = vector.extract_strided_slice %133 {offsets = [0, 2], sizes = [8, 1], strides = [1, 1]} : vector<8x4xf32> to vector<8x1xf32>
    %146 = vector.extract_strided_slice %132 {offsets = [2, 0], sizes = [1, 256], strides = [1, 1]} : vector<4x256xf32> to vector<1x256xf32>
    %147 = vector.broadcast %145 : vector<8x1xf32> to vector<8x256xf32>
    %148 = vector.broadcast %146 : vector<1x256xf32> to vector<8x256xf32>
    %149 = arith.mulf %147, %148 : vector<8x256xf32>
    %150 = arith.addf %144, %149 : vector<8x256xf32>
    %151 = vector.extract_strided_slice %133 {offsets = [0, 3], sizes = [8, 1], strides = [1, 1]} : vector<8x4xf32> to vector<8x1xf32>
    %152 = vector.extract_strided_slice %132 {offsets = [3, 0], sizes = [1, 256], strides = [1, 1]} : vector<4x256xf32> to vector<1x256xf32>
    %153 = vector.broadcast %151 : vector<8x1xf32> to vector<8x256xf32>
    %154 = vector.broadcast %152 : vector<1x256xf32> to vector<8x256xf32>
    %155 = arith.mulf %153, %154 : vector<8x256xf32>
    %156 = arith.addf %150, %155 : vector<8x256xf32>
    %c1_45 = arith.constant 1 : index
    %c0_46 = arith.constant 0 : index
    %c0_47 = arith.constant 0 : index
    %157 = vector.load %arg5[%c1_45, %c0_46, %c0_47] : memref<2x8x256xf32, #tpu.memory_space<vmem>>, vector<1x8x256xf32>
    %158 = vector.shape_cast %157 : vector<1x8x256xf32> to vector<8x256xf32>
    %159 = vector.shape_cast %156 : vector<8x256xf32> to vector<1x8x256xf32>
    tpu.vector_store %arg5[%c1_45, %c0_46, %c0_47], %159 {strides = array<i32>} : memref<2x8x256xf32, #tpu.memory_space<vmem>>, vector<1x8x256xf32>,
    return
  }
}

</mosaic_0001>

<bundles_post_ra>
// kernel: tpu_custom_call.1
= control target key start
LH: loop header
LB: loop body
LE: loop exit
PB: predicated region body
PF: predicated region fallthrough
CT: control target
= control target key end

     0   :  { %10 = vsyncpa [#allocation4], 0  ;;  %s829_s0 = inlined_call_operand.vmem [shape: f32[2,4,256], index: 0, kind: input, shape index: {}]   ;;  %s830_s1 = inlined_call_operand.hbm [shape: f32[4,4], index: 1, kind: input, shape index: {}]   ;;  %s831_s2 = inlined_call_operand.vmem [shape: f32[8,4], index: 2, kind: input, shape index: {}]   ;;  %s832_s3 = inlined_call_operand.vmem [shape: f32[4,1], index: 3, kind: input, shape index: {}]   ;;  %s833_s4 = inlined_call_operand.vmem [shape: f32[4,1], index: 4, kind: input, shape index: {}]   ;;  %s834_s5 = inlined_call_operand.hbm [shape: f32[2,8,256], index: 5, kind: output, shape index: {}]  }
   0x1   :  { %11 = vsyncpa [#allocation5], 0  ;;  %s647_s18 = smov [#allocation3]  }
   0x2   :  { %s20_s19 = sshll.u32 %s647_s18, 4  ;;  %s21_s19 = int_to_ptr.vmem [resolvable:$true] %s20_s19 }
   0x3   :  { %s611_s20 = scalar_lea.vmem %s21_s19, 64  ;;  %p616_p1 = scmp.lt.s32.totalorder %s21_s19, %s21_s19 }
   0x4   :  { %p612_p0 = scmp.ne.s32.totalorder %s21_s19, %s611_s20  ;;  %p617_p2 = scmp.lt.s32.totalorder %s611_s20, %s611_s20 }
   0x6   :  { %p618_p3 = por %p617_p2, %p616_p1 }
   0x8   :  { %p619_p4 = pnand %p618_p3, %p612_p0 }
   0xa   :  { %622 = shalt.err (!%p619_p4)
}
   0xb   :  { %23 = dma.hbm_to_vmem [thread:$0]  %s830_s1, 64, %s21_s19, [#allocation4]  }
   0xc   :  { %643 = dma.done.wait [#allocation4], 64  }
   0xd   :  { %644 = vsyncadd [#allocation4], 4294967232  ;;  %v648_v0 = vmov 0   ;;  %v152_v1 = vld [vmem:[#allocation3] sm:$0xf]  ;;  %v649_v3 = vmov 1   ;;  %v41_v6 = vlaneseq }
   0xe   :  { %588 = vset.pattern.permute.xlu1 %v648_v0  ;;  %586 = vset.pattern.permute.xlu0 %v648_v0  ;;  %v33_v2 = vld [vmem:[#allocation3] sm:$0xf]  ;;  %v650_v4 = vmov 2   ;;  %v651_v5 = vmov 3   ;;  %v576_v22 = vld [vmem:[%s829_s0 + $0x8] sm:$0xff]  ;;  %vm146_vm0 = vcmask 1043456  }
   0xf   :  { %157 = vperm.xlu1 %588, %v152_v1   ;;  %37 = vperm.xlu0 %586, %v33_v2   ;;  %v698_v7 = vshrl.u32 %v41_v6, 7  ;;  %v34_v9 = vld [vmem:[%s829_s0] sm:$0xff] }
  0x11   :  { %v701_v8 = vsub.s32 0, %v698_v7  ;;  %v707_v10 = vsub.s32 4, %v698_v7  ;;  %v710_v11 = vsub.s32 1, %v698_v7  ;;  %v713_v12 = vsub.s32 5, %v698_v7 }
  0x12   :  { %v716_v13 = vsub.s32 2, %v698_v7  ;;  %v719_v14 = vsub.s32 6, %v698_v7  ;;  %v731_v24 = vsub.s32 3, %v698_v7  ;;  %v734_v25 = vsub.s32 7, %v698_v7 }
  0x13   :  { %589 = vset.pattern.permute.xlu1 %v649_v3  ;;  %587 = vset.pattern.permute.xlu0 %v649_v3  ;;  %v44_v16 = vrot.slane %v34_v9, %v701_v8  ;;  %v48_v17 = vrot.slane %v34_v9, %v707_v10  ;;  %v68_v19 = vrot.slane %v34_v9, %v710_v11 }
  0x14   :  { %182 = vperm.xlu1 %589, %v152_v1   ;;  %62 = vperm.xlu0 %587, %v33_v2   ;;  %v72_v20 = vrot.slane %v34_v9, %v713_v12  ;;  %v94_v21 = vrot.slane %v34_v9, %v716_v13  ;;  %v98_v23 = vrot.slane %v34_v9, %v719_v14 }
  0x15   :  { %v54_v26 = vrot.slane %v44_v16, %v701_v8  ;;  %v58_v27 = vrot.slane %v48_v17, %v701_v8  ;;  %v78_v28 = vrot.slane %v68_v19, %v710_v11  ;;  %v188_v30 = vrot.slane %v576_v22, %v710_v11 }
  0x16   :  { %v82_v29 = vrot.slane %v72_v20, %v710_v11  ;;  %v192_v31 = vrot.slane %v576_v22, %v713_v12  ;;  %v164_v34 = vrot.slane %v576_v22, %v701_v8  ;;  %v168_v35 = vrot.slane %v576_v22, %v707_v10 }
  0x17   :  { %v104_v36 = vrot.slane %v94_v21, %v716_v13  ;;  %v214_v37 = vrot.slane %v576_v22, %v716_v13  ;;  %v108_v38 = vrot.slane %v98_v23, %v716_v13  ;;  %v218_v39 = vrot.slane %v576_v22, %v719_v14 }
  0x18   :  { %590 = vset.pattern.permute.xlu1 %v650_v4  ;;  %591 = vset.pattern.permute.xlu0 %v650_v4  ;;  %v120_v40 = vrot.slane %v34_v9, %v731_v24  ;;  %v124_v41 = vrot.slane %v34_v9, %v734_v25  ;;  %v198_v46 = vrot.slane %v188_v30, %v710_v11 }
  0x19   :  { %88 = vperm.xlu1 %590, %v33_v2   ;;  %208 = vperm.xlu0 %591, %v152_v1   ;;  %v202_v47 = vrot.slane %v192_v31, %v710_v11  ;;  %v174_v48 = vrot.slane %v164_v34, %v701_v8  ;;  %v178_v49 = vrot.slane %v168_v35, %v701_v8 }
  0x1a   :  { %v240_v51 = vrot.slane %v576_v22, %v731_v24  ;;  %v244_v52 = vrot.slane %v576_v22, %v734_v25  ;;  %v224_v53 = vrot.slane %v214_v37, %v716_v13  ;;  %v228_v54 = vrot.slane %v218_v39, %v716_v13 }
  0x1b   :  { %v130_v55 = vrot.slane %v120_v40, %v731_v24  ;;  %v134_v56 = vrot.slane %v124_v41, %v731_v24 }
  0x1d   :  { %592 = vset.pattern.permute.xlu1 %v651_v5  ;;  %594 = vset.pattern.permute.xlu0 %v648_v0 }
  0x1e   :  { %114 = vperm.xlu1 %592, %v33_v2   ;;  %v254_v2 = vrot.slane %v244_v52, %v731_v24 }
  0x22   :  { %234 = vperm.xlu1 %592, %v152_v1   ;;  %v250_v1 = vrot.slane %v240_v51, %v731_v24 }
  0x26   :  { %593 = vset.pattern.permute.xlu1 %v648_v0 }
  0x8a   :  { %v158_v15 = vpop.permute.xlu1 %157  ;;  %v38_v18 = vpop.permute.xlu0 %37 }
  0x8b   :  { %v59_v42 = vmul.f32 %v54_v26, %v38_v18  ;;  %v60_v43 = vmul.f32 %v58_v27, %v38_v18  ;;  %v179_v6 = vmul.f32 %v174_v48, %v158_v15  ;;  %v180_v9 = vmul.f32 %v178_v49, %v158_v15 }
  0x8f   :  { %v183_v32 = vpop.permute.xlu1 %182  ;;  %v63_v33 = vpop.permute.xlu0 %62 }
  0x90   :  { %v83_v44 = vmul.f32 %v78_v28, %v63_v33  ;;  %v84_v45 = vmul.f32 %v82_v29, %v63_v33  ;;  %v203_v62 = vmul.f32 %v198_v46, %v183_v32  ;;  %v204_v63 = vmul.f32 %v202_v47, %v183_v32 }
  0x91   :  { %v652_v47 = vmov 839922192  }
  0x92   :  { %v85_v57 = vadd.f32 %v83_v44, %v59_v42  ;;  %v86_v58 = vadd.f32 %v84_v45, %v60_v43  ;;  %v205_v23 = vadd.f32 %v203_v62, %v179_v6  ;;  %v206_v26 = vadd.f32 %v204_v63, %v180_v9 }
  0x93   :  { %v278_v48 = vunpack.c.l.s4 %v652_v47 }
  0x94   :  { %v89_v50 = vpop.permute.xlu1 %88  ;;  %v209_v61 = vpop.permute.xlu0 %208 }
  0x95   :  { %v109_v59 = vmul.f32 %v104_v36, %v89_v50  ;;  %v110_v60 = vmul.f32 %v108_v38, %v89_v50  ;;  %v229_v16 = vmul.f32 %v224_v53, %v209_v61  ;;  %v230_v17 = vmul.f32 %v228_v54, %v209_v61 }
  0x96   :  { %v279_v49 = vunpack.c.0.s8 %v278_v48 }
  0x97   :  { %v111_v19 = vadd.f32 %v109_v59, %v85_v57  ;;  %v112_v20 = vadd.f32 %v110_v60, %v86_v58  ;;  %v231_v29 = vadd.f32 %v229_v16, %v205_v23  ;;  %v232_v30 = vadd.f32 %v230_v17, %v206_v26  ;;  %v312_v23 = vld [vmem:[%s833_s4] sm:$0xf] }
  0x98   :  { %v282_v52 = vsub.s32 %v279_v49, %v698_v7 }
  0x99   :  { %v115_v18 = vpop.permute.xlu1 %114 }
  0x9a   :  { %v135_v21 = vmul.f32 %v130_v55, %v115_v18  ;;  %v136_v22 = vmul.f32 %v134_v56, %v115_v18 }
  0x9c   :  { %v137_v27 = vadd.f32 %v135_v21, %v111_v19  ;;  %v138_v28 = vadd.f32 %v136_v22, %v112_v20  ;;  %v308_v20 = vld [vmem:[%s832_s3] sm:$0xf] }
  0x9d   :  { %v235_v31 = vpop.permute.xlu1 %234 }
  0x9e   :  { %v139_v32 = vmax.f32 %v137_v27, 0.0  ;;  %v140_v33 = vmax.f32 %v138_v28, 0.0  ;;  %v255_v34 = vmul.f32 %v250_v1, %v235_v31  ;;  %v256_v35 = vmul.f32 %v254_v2, %v235_v31  ;;  %v341_v27 = vld [vmem:[%s831_s2] sm:$0xff]  ;;  %s653_s2 = smov [#allocation6]  }
  0x9f   :  { %s564_s3 = sshll.u32 %s653_s2, 4  ;;  %s565_s3 = int_to_ptr.vmem [resolvable:$true] %s564_s3 }
  0xa0   :  { %v762_v15 = vcombine.low %v139_v32, %v140_v33  ;;  %v257_v36 = vadd.f32 %v255_v34, %v231_v29  ;;  %v258_v37 = vadd.f32 %v256_v35, %v232_v30  ;;  %v147_v38 = vsel %vm146_vm0, %v139_v32, 0.0  ;;  %s623_s4 = scalar_lea.vmem %s565_s3, 512  ;;  %p628_p6 = scmp.lt.s32.totalorder %s565_s3, %s565_s3 }
  0xa1   :  { %v148_v39 = vsel %vm146_vm0, %v140_v33, 0.0  ;;  %p624_p5 = scmp.ne.s32.totalorder %s565_s3, %s623_s4  ;;  %p629_p7 = scmp.lt.s32.totalorder %s623_s4, %s623_s4 }
  0xa2   :  { %v259_v40 = vmax.f32 %v257_v36, 0.0  ;;  %v260_v41 = vmax.f32 %v258_v37, 0.0  ;;  %v149_v42 = vadd.f32 %v148_v39, %v147_v38 }
  0xa3   :  { %p630_p8 = por %p629_p7, %p628_p6 }
  0xa4   :  { %v766_v43 = vcombine.low %v259_v40, %v260_v41  ;;  %150 = vadd.xlane.f32.xlu0 %v149_v42  ;;  %v267_v44 = vsel %vm146_vm0, %v259_v40, 0.0  ;;  %v268_v45 = vsel %vm146_vm0, %v260_v41, 0.0 }
  0xa5   :  { %v269_v46 = vadd.f32 %v268_v45, %v267_v44  ;;  %p631_p9 = pnand %p630_p8, %p624_p5 }
  0xa7   :  { %270 = vadd.xlane.f32.xlu1 %v269_v46 }
 0x12d   :  { %v151_v50 = vpop.xlane.xlu0 %150 }
 0x130   :  { %v271_v51 = vpop.xlane.xlu1 %270 }
 0x131   :  { %v272_v53 = vadd.f32 %v271_v51, %v151_v50 }
 0x133   :  { %v274_v54 = vmul.f32 0.001953125, %v272_v53 }
 0x135   :  { %v283_v55 = vrot.slane %v274_v54, %v282_v52 }
 0x137   :  { %v285_v56 = vsub.f32 %v762_v15, %v283_v55  ;;  %v296_v57 = vsub.f32 %v766_v43, %v283_v55 }
 0x139   :  { %v286_v58 = vmul.f32 %v285_v56, %v285_v56  ;;  %v297_v59 = vmul.f32 %v296_v57, %v296_v57 }
 0x13b   :  { %v288_v60 = vcombine.high %v286_v58, %v286_v58  ;;  %v299_v61 = vcombine.high %v297_v59, %v297_v59  ;;  %v290_v62 = vsel %vm146_vm0, %v286_v58, 0.0  ;;  %v301_v7 = vsel %vm146_vm0, %v297_v59, 0.0 }
 0x13d   :  { %v291_v63 = vsel %vm146_vm0, %v288_v60, 0.0  ;;  %v302_v2 = vsel %vm146_vm0, %v299_v61, 0.0 }
 0x13e   :  { %v292_v1 = vadd.f32 %v291_v63, %v290_v62  ;;  %v303_v6 = vadd.f32 %v302_v2, %v301_v7 }
 0x140   :  { %293 = vadd.xlane.f32.xlu0 %v292_v1 }
 0x144   :  { %304 = vadd.xlane.f32.xlu0 %v303_v6 }
 0x1c9   :  { %v294_v9 = vpop.xlane.xlu0 %293 }
 0x1cd   :  { %v305_v16 = vpop.xlane.xlu0 %304 }
 0x1ce   :  { %v306_v17 = vadd.f32 %v305_v16, %v294_v9 }
 0x1d0   :  { %v307_v18 = vmul.f32 0.001953125, %v306_v17 }
 0x1d2   :  { %v309_v19 = vadd.f32 1e-05, %v307_v18 }
 0x1d4   :  { %601 = vrsqrt.f32 %v309_v19 }
 0x1e1   :  { %v602_v21 = vpop.eup %601 }
 0x1e2   :  { %v311_v22 = vmul.f32 %v602_v21, %v308_v20 }
 0x1e4   :  { %317 = vperm.xlu1 %593, %v311_v22   ;;  %v313_v26 = vmul.f32 %v311_v22, %v274_v54 }
 0x1e6   :  { %v314_v28 = vsub.f32 %v312_v23, %v313_v26 }
 0x1e8   :  { %344 = vperm.xlu1 %593, %v341_v27   ;;  %330 = vperm.xlu0 %594, %v314_v28  }
 0x1ec   :  { %595 = vset.pattern.permute.xlu1 %v649_v3  ;;  %600 = vset.pattern.permute.xlu0 %v651_v5 }
 0x1ed   :  { %369 = vperm.xlu1 %595, %v341_v27  }
 0x1f1   :  { %596 = vset.pattern.permute.xlu1 %v648_v0 }
 0x1f2   :  { %454 = vperm.xlu1 %596, %v341_v27  }
 0x1f6   :  { %597 = vset.pattern.permute.xlu1 %v649_v3 }
 0x1f7   :  { %479 = vperm.xlu1 %597, %v341_v27  }
 0x1fb   :  { %598 = vset.pattern.permute.xlu1 %v650_v4 }
 0x1fc   :  { %395 = vperm.xlu1 %598, %v341_v27  }
 0x200   :  { %505 = vperm.xlu1 %598, %v341_v27  }
 0x204   :  { %599 = vset.pattern.permute.xlu1 %v651_v5 }
 0x205   :  { %421 = vperm.xlu1 %599, %v341_v27  }
 0x209   :  { %531 = vperm.xlu1 %599, %v341_v27  }
 0x25f   :  { %v318_v29 = vpop.permute.xlu1 %317 }
 0x260   :  { %v325_v32 = vrot.slane %v318_v29, %v282_v52 }
 0x262   :  { %v327_v0 = vmul.f32 %v325_v32, %v762_v15  ;;  %v449_v38 = vmul.f32 %v325_v32, %v766_v43 }
 0x263   :  { %v345_v30 = vpop.permute.xlu1 %344  ;;  %v331_v31 = vpop.permute.xlu0 %330 }
 0x264   :  { %v338_v34 = vrot.slane %v331_v31, %v282_v52 }
 0x266   :  { %v340_v35 = vadd.f32 %v338_v34, %v327_v0  ;;  %v450_v40 = vadd.f32 %v449_v38, %v338_v34 }
 0x268   :  { %v370_v33 = vpop.permute.xlu1 %369  ;;  %v351_v3 = vrot.slane %v340_v35, %v701_v8  ;;  %v355_v4 = vrot.slane %v340_v35, %v707_v10  ;;  %v375_v37 = vrot.slane %v340_v35, %v710_v11  ;;  %v379_v5 = vrot.slane %v340_v35, %v713_v12 }
 0x269   :  { %v401_v45 = vrot.slane %v340_v35, %v716_v13  ;;  %v405_v46 = vrot.slane %v340_v35, %v719_v14  ;;  %v461_v48 = vrot.slane %v450_v40, %v701_v8  ;;  %v465_v49 = vrot.slane %v450_v40, %v707_v10 }
 0x26a   :  { %v361_v41 = vrot.slane %v351_v3, %v701_v8  ;;  %v365_v42 = vrot.slane %v355_v4, %v701_v8  ;;  %v385_v15 = vrot.slane %v375_v37, %v710_v11  ;;  %v389_v44 = vrot.slane %v379_v5, %v710_v11 }
 0x26b   :  { %v485_v43 = vrot.slane %v450_v40, %v710_v11  ;;  %v489_v50 = vrot.slane %v450_v40, %v713_v12  ;;  %v411_v55 = vrot.slane %v401_v45, %v716_v13  ;;  %v415_v56 = vrot.slane %v405_v46, %v716_v13 }
 0x26c   :  { %v366_v51 = vmul.f32 %v361_v41, %v345_v30  ;;  %v367_v52 = vmul.f32 %v365_v42, %v345_v30  ;;  %v390_v53 = vmul.f32 %v385_v15, %v370_v33  ;;  %v391_v54 = vmul.f32 %v389_v44, %v370_v33 }
 0x26d   :  { %v455_v36 = vpop.permute.xlu1 %454  ;;  %v511_v57 = vrot.slane %v450_v40, %v716_v13  ;;  %v515_v58 = vrot.slane %v450_v40, %v719_v14  ;;  %v427_v60 = vrot.slane %v340_v35, %v731_v24  ;;  %v431_v10 = vrot.slane %v340_v35, %v734_v25 }
 0x26e   :  { %v471_v61 = vrot.slane %v461_v48, %v701_v8  ;;  %v475_v12 = vrot.slane %v465_v49, %v701_v8  ;;  %v392_v1 = vadd.f32 %v390_v53, %v366_v51  ;;  %v393_v2 = vadd.f32 %v391_v54, %v367_v52 }
 0x26f   :  { %v495_v7 = vrot.slane %v485_v43, %v710_v11  ;;  %v499_v6 = vrot.slane %v489_v50, %v710_v11  ;;  %v521_v9 = vrot.slane %v511_v57, %v716_v13  ;;  %v525_v14 = vrot.slane %v515_v58, %v716_v13 }
 0x270   :  { %v537_v16 = vrot.slane %v450_v40, %v731_v24  ;;  %v541_v17 = vrot.slane %v450_v40, %v734_v25  ;;  %v437_v8 = vrot.slane %v427_v60, %v731_v24  ;;  %v441_v20 = vrot.slane %v431_v10, %v731_v24 }
 0x271   :  { %v476_v21 = vmul.f32 %v471_v61, %v455_v36  ;;  %v477_v22 = vmul.f32 %v475_v12, %v455_v36 }
 0x272   :  { %v480_v39 = vpop.permute.xlu1 %479  ;;  %v547_v13 = vrot.slane %v537_v16, %v731_v24  ;;  %v551_v31 = vrot.slane %v541_v17, %v731_v24 }
 0x273   :  { %v500_v18 = vmul.f32 %v495_v7, %v480_v39  ;;  %v501_v19 = vmul.f32 %v499_v6, %v480_v39 }
 0x275   :  { %v502_v25 = vadd.f32 %v500_v18, %v476_v21  ;;  %v503_v32 = vadd.f32 %v501_v19, %v477_v22 }
 0x277   :  { %v396_v47 = vpop.permute.xlu1 %395 }
 0x278   :  { %v416_v62 = vmul.f32 %v411_v55, %v396_v47  ;;  %v417_v63 = vmul.f32 %v415_v56, %v396_v47 }
 0x27a   :  { %v418_v23 = vadd.f32 %v416_v62, %v392_v1  ;;  %v419_v26 = vadd.f32 %v417_v63, %v393_v2 }
 0x27b   :  { %v506_v59 = vpop.permute.xlu1 %505 }
 0x27c   :  { %v526_v11 = vmul.f32 %v521_v9, %v506_v59  ;;  %v527_v28 = vmul.f32 %v525_v14, %v506_v59 }
 0x27e   :  { %v528_v35 = vadd.f32 %v526_v11, %v502_v25  ;;  %v529_v36 = vadd.f32 %v527_v28, %v503_v32 }
 0x280   :  { %v422_v27 = vpop.permute.xlu1 %421 }
 0x281   :  { %v442_v29 = vmul.f32 %v437_v8, %v422_v27  ;;  %v443_v30 = vmul.f32 %v441_v20, %v422_v27 }
 0x283   :  { %v444_v33 = vadd.f32 %v442_v29, %v418_v23  ;;  %v445_v34 = vadd.f32 %v443_v30, %v419_v26 }
 0x284   :  { %v532_v0 = vpop.permute.xlu1 %531 }
 0x285   :  { %446 = vst [vmem:[#allocation6] sm:$0xff] %v444_v33  ;;  %447 = vst [vmem:[#allocation6 + $0x8] sm:$0xff] %v445_v34  ;;  %v552_v3 = vmul.f32 %v547_v13, %v532_v0  ;;  %v553_v4 = vmul.f32 %v551_v31, %v532_v0 }
 0x287   :  { %v554_v37 = vadd.f32 %v552_v3, %v528_v35  ;;  %v555_v5 = vadd.f32 %v553_v4, %v529_v36 }
 0x289   :  { %557 = vst [vmem:[#allocation6 + $0x10] sm:$0xff] %v554_v37  ;;  %558 = vst [vmem:[#allocation6 + $0x18] sm:$0xff] %v555_v5 }
 0x28a   :  { %634 = shalt.err (!%p631_p9)
}
 0x28b   :  { %s654_s6 = smov 256   ;;  %s655_s7 = smov 16  }
 0x28c   :  { %570 = dma.vmem_to_hbm [thread:$0]  %s565_s3, 512, %s834_s5, [#allocation5], %s654_s6, %s654_s6, %s655_s7  }
 0x28d   :  { %645 = dma.done.wait [#allocation5], 512  }
 0x28e   :  { %646 = vsyncadd [#allocation5], 4294966784 }
 0x28f   :  { %574 = vsyncpa [#allocation4], 1 }
 0x290   :  { %575 = vsyncpa [#allocation5], 1 }

</bundles_post_ra>
